<compile_context>
chip_gen: v7x
topology: tpu7x:2x2x1
jax: 0.10.0
libtpu: 0.0.40
codegen_flags: <defaults>
</compile_context>

<pallas_src>
import jax
import jax.numpy as jnp
import numpy as np
from jax import lax
from jax.experimental import pallas as pl
from jax.experimental.pallas import tpu as pltpu


def _round_up(x, m):
    return ((x + m - 1) // m) * m


def _vmem_capacity_bytes():
    """Physical VMEM of the local TPU generation (conservative default)."""
    try:
        return int(pltpu.get_tpu_info().vmem_capacity_bytes)
    except Exception:
        return 64 * 1024 * 1024  # v7x-safe default


# ---------------------------------------------------------------------------
# Fast path: table resident in VMEM, per-tile row-copy gather.
# ---------------------------------------------------------------------------

_UNROLL = 8  # rows copied per fori_loop iteration (tile_n is a multiple of 8)


def _resident_gather_kernel(ids_ref, table_ref, out_ref):
    # ids_ref  : SMEM (n_pad,) int32   -- all flat ids (scalar prefetch)
    # table_ref: VMEM (V, E)           -- resident table (constant block index)
    # out_ref  : VMEM (tile_n, E)
    tile_n = out_ref.shape[0]
    base = pl.program_id(0) * tile_n

    def body(it, carry):
        r0 = it * _UNROLL
        for j in range(_UNROLL):                      # static 8-way unroll
            r = r0 + j
            idx = ids_ref[base + r]
            out_ref[pl.ds(r, 1), :] = table_ref[pl.ds(idx, 1), :]
        return carry

    lax.fori_loop(0, tile_n // _UNROLL, body, 0)


# ---------------------------------------------------------------------------
# Large-vocab path: table stays in HBM, manual double-buffered row DMAs.
# ---------------------------------------------------------------------------

_GATHER_ROWS = 16  # table rows gathered per grid step on the HBM path


def _hbm_gather_kernel(ids_ref, table_hbm, out_ref, buf, sem):
    # ids_ref  : SMEM (n_pad,) int32        (scalar prefetch)
    # table_hbm: HBM  (V, E)                (memory_space=pl.ANY)
    # out_ref  : VMEM (_GATHER_ROWS, E)
    # buf      : VMEM (2, _GATHER_ROWS, E)  double-buffered row staging
    # sem      : DMA  (2, _GATHER_ROWS)
    i = pl.program_id(0)
    n = pl.num_programs(0)
    rows = buf.shape[1]

    def fetch(step, slot):
        base = step * rows
        for j in range(rows):
            pltpu.make_async_copy(
                table_hbm.at[ids_ref[base + j]], buf.at[slot, j],
                sem.at[slot, j]).start()

    @pl.when(i == 0)
    def _():
        fetch(0, 0)          # prologue: prime slot 0

    slot = lax.rem(i, 2)

    @pl.when(i + 1 < n)
    def _():
        fetch(i + 1, 1 - slot)   # prefetch next step's rows into other slot

    for j in range(rows):
        pltpu.make_async_copy(table_hbm.at[0], buf.at[slot, j],
                              sem.at[slot, j]).wait()
    out_ref[...] = buf[slot]


def _hbm_row_gather(flat_ids, table):
    """Gather table rows for `flat_ids` keeping the table in HBM."""
    (N,) = flat_ids.shape
    V, E = table.shape
    itemsize = table.dtype.itemsize
    rows = _GATHER_ROWS
    n_pad = _round_up(max(N, rows), rows)
    if n_pad != N:
        flat_ids = jnp.pad(flat_ids, (0, n_pad - N))  # pad with id 0 (zero row)

    cost = pl.CostEstimate(
        flops=0, transcendentals=0,
        bytes_accessed=n_pad * 4 + 2 * n_pad * E * itemsize)

    out = pl.pallas_call(
        _hbm_gather_kernel,
        grid_spec=pltpu.PrefetchScalarGridSpec(
            num_scalar_prefetch=1,
            grid=(n_pad // rows,),
            in_specs=[pl.BlockSpec(memory_space=pl.ANY)],   # table stays in HBM
            out_specs=pl.BlockSpec((rows, E), lambda i, ids: (i, 0)),
            scratch_shapes=[
                pltpu.VMEM((2, rows, E), table.dtype),
                pltpu.SemaphoreType.DMA((2, rows)),
            ],
        ),
        out_shape=jax.ShapeDtypeStruct((n_pad, E), table.dtype),
        # Manual cross-step double buffering keyed on program_id==0 must stay
        # one sequential loop -> "arbitrary" (no megacore split of this axis).
        compiler_params=pltpu.CompilerParams(
            dimension_semantics=("arbitrary",)),
        cost_estimate=cost,
    )(flat_ids, table)
    return out[:N]


# ---------------------------------------------------------------------------
# Wrapper
# ---------------------------------------------------------------------------

def embedding_lookup(word, table, *, tile_n=1024):
    """word: int32[B, S]; table: float32[V, E] -> float32[B, S, E]."""
    B, S = word.shape
    V, E = table.shape
    N = B * S
    itemsize = table.dtype.itemsize

    # NOTE: PyTorch's nn.Embedding raises on out-of-range ids; we clip instead
    # (safety net, also covers the padded tail).  Behavioral difference only
    # for invalid inputs.
    # TODO(synk): for extremely long sequences (ids SMEM footprint ~4*N bytes)
    # switch the id delivery to per-tile SMEM blocks instead of one prefetch.
    flat_ids = jnp.clip(word.reshape(N).astype(jnp.int32), 0, V - 1)

    table_bytes = V * E * itemsize
    vmem_cap = _vmem_capacity_bytes()
    budget = vmem_cap - (8 << 20)          # slack for compiler-internal scratch

    # Residency gate: conservatively assume the pipeliner double-buffers the
    # (constant-index) table block plus double-buffered output tiles.
    # On v7x (64 MiB) this gates at ~26 MiB tables; on v5e/v6e (128 MiB) at
    # ~58 MiB -- no hard 64 MiB clamp imposed on the bigger-VMEM generations.
    # TODO(synk): single-buffer the constant table block (pl.Buffered(1)) to
    # roughly double the admissible table size once that path is validated.
    avail_for_out = budget - 2 * table_bytes
    if avail_for_out < 2 * (8 * E * itemsize):
        # Table too large to keep resident -> pipelined HBM row gather.
        return _hbm_row_gather(flat_ids, table).reshape(B, S, E)

    # Tokens per grid step: as large as the remaining VMEM budget allows,
    # multiple of 8 (f32 sublane), capped by the requested tile_n and by N.
    max_tile_n = (avail_for_out // (2 * E * itemsize)) // 8 * 8
    tile_n = max(8, min(int(tile_n), int(max_tile_n), _round_up(N, 8)))
    tile_n = (tile_n // 8) * 8
    n_pad = _round_up(N, tile_n)
    if n_pad != N:
        flat_ids = jnp.pad(flat_ids, (0, n_pad - N))  # pad with id 0 (zero row)

    out_tile_bytes = tile_n * E * itemsize
    need = 2 * table_bytes + 2 * out_tile_bytes
    vmem_limit = int(min(vmem_cap, max(32 << 20, need + (8 << 20))))

    # Bandwidth-bound op: ~zero FLOPs, roofline bytes.
    cost = pl.CostEstimate(
        flops=0, transcendentals=0,
        bytes_accessed=table_bytes + n_pad * 4 + n_pad * E * itemsize)

    out_flat = pl.pallas_call(
        _resident_gather_kernel,
        grid_spec=pltpu.PrefetchScalarGridSpec(
            num_scalar_prefetch=1,           # flat ids -> SMEM
            grid=(n_pad // tile_n,),
            in_specs=[
                # Whole table, constant block index -> fetched from HBM once,
                # VMEM-resident for every tile.
                pl.BlockSpec((V, E), lambda i, ids: (0, 0)),
            ],
            out_specs=pl.BlockSpec((tile_n, E), lambda i, ids: (i, 0)),
        ),
        out_shape=jax.ShapeDtypeStruct((n_pad, E), table.dtype),
        compiler_params=pltpu.CompilerParams(
            dimension_semantics=("parallel",),   # disjoint output tiles
            vmem_limit_bytes=vmem_limit,
        ),
        cost_estimate=cost,
    )(flat_ids, table)

    return out_flat[:N].reshape(B, S, E)


def init_embedding_table(key, word_total, embedding_size):
    """xavier_normal_ init, then zero row 0 (padding_idx=0)."""
    std = float(np.sqrt(2.0 / (word_total + embedding_size)))
    w = jax.random.normal(key, (word_total, embedding_size), jnp.float32) * std
    w = w.at[0].set(0.0)
    # TODO(synk): if the table is trained, the backward must also mask grads
    # to row 0 (padding_idx semantics); forward only needs the zeroed row.
    return w


if __name__ == "__main__":
    # Small config: word_total=64, embedding_size=128, batch=2, seq=8.
    word_total = 64
    embedding_size = 128
    B, S = 2, 8

    key = jax.random.PRNGKey(0)
    k_w, k_ids = jax.random.split(key)

    table = init_embedding_table(k_w, word_total, embedding_size)
    word = jax.random.randint(k_ids, (B, S), 0, word_total, dtype=jnp.int32)
    # Force a couple of padding tokens to exercise padding_idx=0 (zero row).
    word = word.at[0, 0].set(0)
    word = word.at[1, -1].set(0)

    out = embedding_lookup(word, table)
    out = jax.block_until_ready(out)

    # Reference check against a plain JAX gather (gather is bit-exact).
    ref = jnp.take(table, word, axis=0)
    np.testing.assert_allclose(np.asarray(out), np.asarray(ref),
                               rtol=0.0, atol=0.0)
    assert out.shape == (B, S, embedding_size)
    assert bool(jnp.all(out[0, 0] == 0.0)) and bool(jnp.all(out[1, -1] == 0.0))

    print("KERNEL_OK")
</pallas_src>

<mosaic_0001>
module attributes {stable_mosaic.version = 11 : i64} {
  func.func @_resident_gather_kernel(%arg0: i32, %arg1: memref<16xi32, #tpu.memory_space<smem>>, %arg2: memref<64x128xf32, #tpu.memory_space<vmem>>, %arg3: memref<16x128xf32, #tpu.memory_space<vmem>>) attributes {dimension_semantics = [#tpu.dimension_semantics<parallel>], iteration_bounds = array<i64: 1>, scalar_prefetch = 1 : i64, scratch_operands = 0 : i64, tpu.core_type = #tpu.core_type<tc>, window_params = [{pipeline_mode = #tpu.pipeline_mode<synchronous>, transform_indices = @transform_0, window_bounds = array<i64: 64, 128>}, {transform_indices = @transform_1, window_bounds = array<i64: 16, 128>}]} {
    %c16_i32 = arith.constant 16 : i32
    %0 = arith.muli %arg0, %c16_i32 : i32
    %c0_i32 = arith.constant 0 : i32
    %c2_i32 = arith.constant 2 : i32
    %1 = arith.addi %c0_i32, %c2_i32 : i32
    %c1_i32 = arith.constant 1 : i32
    scf.for %arg4 = %c0_i32 to %1 step %c1_i32  : i32 {
      %c8_i32 = arith.constant 8 : i32
      %2 = arith.muli %arg4, %c8_i32 : i32
      %c0_i32_1 = arith.constant 0 : i32
      %3 = arith.addi %2, %c0_i32_1 : i32
      %4 = arith.addi %0, %3 : i32
      %5 = arith.index_cast %4 : i32 to index
      %6 = memref.load %arg1[%5] : memref<16xi32, #tpu.memory_space<smem>>
      %7 = arith.index_cast %6 : i32 to index
      %c0 = arith.constant 0 : index
      %8 = vector.load %arg2[%7, %c0] : memref<64x128xf32, #tpu.memory_space<vmem>>, vector<1x128xf32>
      %9 = arith.index_cast %3 : i32 to index
      %c0_2 = arith.constant 0 : index
      %10 = vector.load %arg3[%9, %c0_2] : memref<16x128xf32, #tpu.memory_space<vmem>>, vector<1x128xf32>
      tpu.vector_store %arg3[%9, %c0_2], %8 {strides = array<i32>} : memref<16x128xf32, #tpu.memory_space<vmem>>, vector<1x128xf32>,
      %c1_i32_3 = arith.constant 1 : i32
      %11 = arith.addi %2, %c1_i32_3 : i32
      %12 = arith.addi %0, %11 : i32
      %13 = arith.index_cast %12 : i32 to index
      %14 = memref.load %arg1[%13] : memref<16xi32, #tpu.memory_space<smem>>
      %15 = arith.index_cast %14 : i32 to index
      %c0_4 = arith.constant 0 : index
      %16 = vector.load %arg2[%15, %c0_4] : memref<64x128xf32, #tpu.memory_space<vmem>>, vector<1x128xf32>
      %17 = arith.index_cast %11 : i32 to index
      %c0_5 = arith.constant 0 : index
      %18 = vector.load %arg3[%17, %c0_5] : memref<16x128xf32, #tpu.memory_space<vmem>>, vector<1x128xf32>
      tpu.vector_store %arg3[%17, %c0_5], %16 {strides = array<i32>} : memref<16x128xf32, #tpu.memory_space<vmem>>, vector<1x128xf32>,
      %c2_i32_6 = arith.constant 2 : i32
      %19 = arith.addi %2, %c2_i32_6 : i32
      %20 = arith.addi %0, %19 : i32
      %21 = arith.index_cast %20 : i32 to index
      %22 = memref.load %arg1[%21] : memref<16xi32, #tpu.memory_space<smem>>
      %23 = arith.index_cast %22 : i32 to index
      %c0_7 = arith.constant 0 : index
      %24 = vector.load %arg2[%23, %c0_7] : memref<64x128xf32, #tpu.memory_space<vmem>>, vector<1x128xf32>
      %25 = arith.index_cast %19 : i32 to index
      %c0_8 = arith.constant 0 : index
      %26 = vector.load %arg3[%25, %c0_8] : memref<16x128xf32, #tpu.memory_space<vmem>>, vector<1x128xf32>
      tpu.vector_store %arg3[%25, %c0_8], %24 {strides = array<i32>} : memref<16x128xf32, #tpu.memory_space<vmem>>, vector<1x128xf32>,
      %c3_i32 = arith.constant 3 : i32
      %27 = arith.addi %2, %c3_i32 : i32
      %28 = arith.addi %0, %27 : i32
      %29 = arith.index_cast %28 : i32 to index
      %30 = memref.load %arg1[%29] : memref<16xi32, #tpu.memory_space<smem>>
      %31 = arith.index_cast %30 : i32 to index
      %c0_9 = arith.constant 0 : index
      %32 = vector.load %arg2[%31, %c0_9] : memref<64x128xf32, #tpu.memory_space<vmem>>, vector<1x128xf32>
      %33 = arith.index_cast %27 : i32 to index
      %c0_10 = arith.constant 0 : index
      %34 = vector.load %arg3[%33, %c0_10] : memref<16x128xf32, #tpu.memory_space<vmem>>, vector<1x128xf32>
      tpu.vector_store %arg3[%33, %c0_10], %32 {strides = array<i32>} : memref<16x128xf32, #tpu.memory_space<vmem>>, vector<1x128xf32>,
      %c4_i32 = arith.constant 4 : i32
      %35 = arith.addi %2, %c4_i32 : i32
      %36 = arith.addi %0, %35 : i32
      %37 = arith.index_cast %36 : i32 to index
      %38 = memref.load %arg1[%37] : memref<16xi32, #tpu.memory_space<smem>>
      %39 = arith.index_cast %38 : i32 to index
      %c0_11 = arith.constant 0 : index
      %40 = vector.load %arg2[%39, %c0_11] : memref<64x128xf32, #tpu.memory_space<vmem>>, vector<1x128xf32>
      %41 = arith.index_cast %35 : i32 to index
      %c0_12 = arith.constant 0 : index
      %42 = vector.load %arg3[%41, %c0_12] : memref<16x128xf32, #tpu.memory_space<vmem>>, vector<1x128xf32>
      tpu.vector_store %arg3[%41, %c0_12], %40 {strides = array<i32>} : memref<16x128xf32, #tpu.memory_space<vmem>>, vector<1x128xf32>,
      %c5_i32 = arith.constant 5 : i32
      %43 = arith.addi %2, %c5_i32 : i32
      %44 = arith.addi %0, %43 : i32
      %45 = arith.index_cast %44 : i32 to index
      %46 = memref.load %arg1[%45] : memref<16xi32, #tpu.memory_space<smem>>
      %47 = arith.index_cast %46 : i32 to index
      %c0_13 = arith.constant 0 : index
      %48 = vector.load %arg2[%47, %c0_13] : memref<64x128xf32, #tpu.memory_space<vmem>>, vector<1x128xf32>
      %49 = arith.index_cast %43 : i32 to index
      %c0_14 = arith.constant 0 : index
      %50 = vector.load %arg3[%49, %c0_14] : memref<16x128xf32, #tpu.memory_space<vmem>>, vector<1x128xf32>
      tpu.vector_store %arg3[%49, %c0_14], %48 {strides = array<i32>} : memref<16x128xf32, #tpu.memory_space<vmem>>, vector<1x128xf32>,
      %c6_i32 = arith.constant 6 : i32
      %51 = arith.addi %2, %c6_i32 : i32
      %52 = arith.addi %0, %51 : i32
      %53 = arith.index_cast %52 : i32 to index
      %54 = memref.load %arg1[%53] : memref<16xi32, #tpu.memory_space<smem>>
      %55 = arith.index_cast %54 : i32 to index
      %c0_15 = arith.constant 0 : index
      %56 = vector.load %arg2[%55, %c0_15] : memref<64x128xf32, #tpu.memory_space<vmem>>, vector<1x128xf32>
      %57 = arith.index_cast %51 : i32 to index
      %c0_16 = arith.constant 0 : index
      %58 = vector.load %arg3[%57, %c0_16] : memref<16x128xf32, #tpu.memory_space<vmem>>, vector<1x128xf32>
      tpu.vector_store %arg3[%57, %c0_16], %56 {strides = array<i32>} : memref<16x128xf32, #tpu.memory_space<vmem>>, vector<1x128xf32>,
      %c7_i32 = arith.constant 7 : i32
      %59 = arith.addi %2, %c7_i32 : i32
      %60 = arith.addi %0, %59 : i32
      %61 = arith.index_cast %60 : i32 to index
      %62 = memref.load %arg1[%61] : memref<16xi32, #tpu.memory_space<smem>>
      %63 = arith.index_cast %62 : i32 to index
      %c0_17 = arith.constant 0 : index
      %64 = vector.load %arg2[%63, %c0_17] : memref<64x128xf32, #tpu.memory_space<vmem>>, vector<1x128xf32>
      %65 = arith.index_cast %59 : i32 to index
      %c0_18 = arith.constant 0 : index
      %66 = vector.load %arg3[%65, %c0_18] : memref<16x128xf32, #tpu.memory_space<vmem>>, vector<1x128xf32>
      tpu.vector_store %arg3[%65, %c0_18], %64 {strides = array<i32>} : memref<16x128xf32, #tpu.memory_space<vmem>>, vector<1x128xf32>,
    }
    %c2_i32_0 = arith.constant 2 : i32
    return
  }
  func.func @transform_0(%arg0: i32, %arg1: memref<16xi32, #tpu.memory_space<smem>>) -> (i32, i32) {
    %c0_i32 = arith.constant 0 : i32
    %c0_i32_0 = arith.constant 0 : i32
    %c0_i32_1 = arith.constant 0 : i32
    return %c0_i32, %c0_i32_0 : i32, i32
  }
  func.func @transform_1(%arg0: i32, %arg1: memref<16xi32, #tpu.memory_space<smem>>) -> (i32, i32) {
    %c0_i32 = arith.constant 0 : i32
    %c0_i32_0 = arith.constant 0 : i32
    return %arg0, %c0_i32 : i32, i32
  }
}

</mosaic_0001>

<bundles_post_ra>
// kernel: tpu_custom_call.1
= control target key start
LH: loop header
LB: loop body
LE: loop exit
PB: predicated region body
PF: predicated region fallthrough
CT: control target
= control target key end

     0   :  { %s311_s0 = inlined_call_operand.hbm [shape: s32[16], index: 0, kind: input, shape index: {}]   ;;  %s312_s1 = inlined_call_operand.hbm [shape: f32[64,128], index: 1, kind: input, shape index: {}]   ;;  %s313_s2 = inlined_call_operand.hbm [shape: f32[16,128], index: 2, kind: output, shape index: {}]  }
   0x1   :  { %s172_s11 = scalar_lea.hbm %s311_s0, 16 }
   0x2   :  { %p173_p0 = scmp.ne.s32.totalorder %s311_s0, %s172_s11  ;;  %p176_p1 = scmp.lt.u32.totalorder %s172_s11, %s311_s0 }
   0x4   :  { %p178_p2 = pnand %p176_p1, %p173_p0 }
   0x6   :  { %181 = shalt.err (!%p178_p2)  }
   0x7   :  { %s240_s16 = smov [#allocation3]  }
   0x8   :  { %8 = dma.hbm_to_smem %s311_s0, 16, %s240_s16, [#allocation2] }
   0x9   :  { %230 = dma.done.wait [#allocation2], 16 }
   0xa   :  { %231 = vsyncadd [#allocation2], 4294967280 }
   0xb   :  { %10 = sfence }
   0xc   :  { %11 = vsyncpa [#allocation5], 0 }
   0xd   :  { %12 = vsyncpa [#allocation6], 0  ;;  %s241_s19 = smov [#allocation4]   ;;  %s182_s23 = scalar_lea.hbm %s312_s1, 1024 }
   0xe   :  { %s18_s20 = sshll.u32 %s241_s19, 4  ;;  %p183_p3 = scmp.ne.s32.totalorder %s312_s1, %s182_s23  ;;  %s19_s20 = int_to_ptr.vmem [resolvable:$true] %s18_s20 }
   0xf   :  { %p186_p4 = scmp.lt.u32.totalorder %s182_s23, %s312_s1 }
  0x11   :  { %p188_p5 = pnand %p186_p4, %p183_p3 }
  0x13   :  { %191 = shalt.err (!%p188_p5)
}
  0x14   :  { %s192_s0 = scalar_lea.vmem %s19_s20, 1024  ;;  %p197_p7 = scmp.lt.s32.totalorder %s19_s20, %s19_s20 }
  0x15   :  { %p193_p6 = scmp.ne.s32.totalorder %s19_s20, %s192_s0  ;;  %p198_p8 = scmp.lt.s32.totalorder %s192_s0, %s192_s0 }
  0x17   :  { %p199_p9 = por %p198_p8, %p197_p7 }
  0x19   :  { %p200_p10 = pnand %p199_p9, %p193_p6 }
  0x1b   :  { %203 = shalt.err (!%p200_p10)
}
  0x1c   :  { %s242_s28 = smov 128   ;;  %s243_s29 = smov 8  }
  0x1d   :  { %24 = dma.hbm_to_vmem [thread:$0]  %s312_s1, 1024, %s19_s20, [#allocation5], %s242_s28, %s242_s28, %s243_s29  }
  0x1e   :  { %232 = dma.done.wait [#allocation5], 1024  }
  0x1f   :  { %233 = vsyncadd [#allocation5], 4294966272  ;;  %s287_s4 = smov 0  }
  0x20 LB: > { %s144_s5 = sshll.u32 %s238_s4, 3  ;;  %s34_s4 = sadd.s32 1, %s238_s4   ;;  %s238_s4 = sphi %s287_s4, %s34_s4  }
  0x21   : > { %s37_s6 = sld [smem:[#allocation3 + %s144_s5]]  ;;  %s42_s7 = sadd.s32 1, %s144_s5 }
  0x22   : > { %s49_s8 = sadd.s32 2, %s144_s5  ;;  %s44_s9 = sld [smem:[#allocation3 + %s42_s7]] }
  0x23   : > { %s51_s10 = sld [smem:[#allocation3 + %s49_s8]]  ;;  %s56_s11 = sadd.s32 3, %s144_s5 }
  0x24   : > { %s63_s12 = sadd.s32 4, %s144_s5  ;;  %s58_s13 = sld [smem:[#allocation3 + %s56_s11]] }
  0x25   : > { %s65_s1 = sld [smem:[#allocation3 + %s63_s12]]  ;;  %s70_s14 = sadd.s32 5, %s144_s5 }
  0x26   : > { %s77_s15 = sadd.s32 6, %s144_s5  ;;  %s72_s16 = sld [smem:[#allocation3 + %s70_s14]] }
  0x27   : > { %s38_s17 = scalar_lea.vmem [#allocation4], %s37_s6  ;;  %s79_s18 = sld [smem:[#allocation3 + %s77_s15]] }
  0x28   : > { %v39_v0 = vld [vmem:[%s38_s17] sm:$0x1]  ;;  %s84_s19 = sadd.s32 7, %s144_s5  ;;  %s40_s20 = scalar_lea.vmem [#allocation7], %s144_s5 }
  0x29   : > { %41 = vst [vmem:[%s40_s20] sm:$0x1] %v39_v0  ;;  %s45_s21 = scalar_lea.vmem [#allocation4], %s44_s9  ;;  %s52_s22 = scalar_lea.vmem [#allocation4], %s51_s10 }
  0x2a   : > { %v46_v1 = vld [vmem:[%s45_s21] sm:$0x1]  ;;  %s86_s23 = sld [smem:[#allocation3 + %s84_s19]]  ;;  %s59_s24 = scalar_lea.vmem [#allocation4], %s58_s13 }
  0x2b   : > { %v53_v2 = vld [vmem:[%s52_s22] sm:$0x1]  ;;  %146 = vst [vmem:[%s40_s20 + $0x1] sm:$0x1] %v46_v1  ;;  %s66_s25 = scalar_lea.vmem [#allocation4], %s65_s1  ;;  %p31_p11 = scmp.ge.s32.totalorder %s34_s4, 2  }
  0x2c   : > { %148 = vst [vmem:[%s40_s20 + $0x2] sm:$0x1] %v53_v2  ;;  %v60_v3 = vld [vmem:[%s59_s24] sm:$0x1]  ;;  %s73_s26 = scalar_lea.vmem [#allocation4], %s72_s16  ;;  %s244_s30 = smov (%p31_p11), [#allocation7]  }
  0x2d   : > { %v67_v4 = vld [vmem:[%s66_s25] sm:$0x1]  ;;  %150 = vst [vmem:[%s40_s20 + $0x3] sm:$0x1] %v60_v3  ;;  %s80_s27 = scalar_lea.vmem [#allocation4], %s79_s18  ;;  %33 = sbr.rel (!%p31_p11) target bundleno = 32 (0x20), region = 51 }
  0x2e   : > { %152 = vst [vmem:[%s40_s20 + $0x4] sm:$0x1] %v67_v4  ;;  %v74_v5 = vld [vmem:[%s73_s26] sm:$0x1]  ;;  %s96_s3 = sshll.u32 (%p31_p11), %s244_s30, 4  ;;  %s97_s3 = int_to_ptr.vmem [resolvable:$true] %s96_s3 }
  0x2f   : > { %154 = vst [vmem:[%s40_s20 + $0x5] sm:$0x1] %v74_v5  ;;  %v81_v6 = vld [vmem:[%s80_s27] sm:$0x1]  ;;  %s204_s5 = scalar_lea.vmem (%p31_p11), %s97_s3, 256  ;;  %p209_p13 = scmp.lt.s32.totalorder (%p31_p11), %s97_s3, %s97_s3 }
  0x30   : > { %156 = vst [vmem:[%s40_s20 + $0x6] sm:$0x1] %v81_v6  ;;  %s87_s0 = scalar_lea.vmem [#allocation4], %s86_s23  ;;  %p205_p12 = scmp.ne.s32.totalorder (%p31_p11), %s97_s3, %s204_s5 }
  0x31   : > { %v88_v7 = vld [vmem:[%s87_s0] sm:$0x1]  ;;  %p210_p0 = scmp.lt.s32.totalorder (%p31_p11), %s204_s5, %s204_s5 }
  0x32   : > { %158 = vst [vmem:[%s40_s20 + $0x7] sm:$0x1] %v88_v7 }
  0x33   :  { %p211_p1 = por (%p31_p11), %p210_p0, %p209_p13 }
  0x35   :  { %p212_p2 = pnand %p211_p1, %p205_p12 }
  0x37   :  { %215 = shalt.err (!%p212_p2)
}
  0x38   :  { %s216_s8 = scalar_lea.hbm %s313_s2, 256 }
  0x39   :  { %p217_p3 = scmp.ne.s32.totalorder %s313_s2, %s216_s8  ;;  %p220_p4 = scmp.lt.u32.totalorder %s216_s8, %s313_s2 }
  0x3b   :  { %p222_p5 = pnand %p220_p4, %p217_p3 }
  0x3d   :  { %225 = shalt.err (!%p222_p5)
}
  0x3e   :  { %102 = dma.vmem_to_hbm [thread:$0]  %s97_s3, 256, %s313_s2, [#allocation6], %s242_s28, %s242_s28, %s243_s29  }
  0x3f   :  { %234 = dma.done.wait [#allocation6], 256  }
  0x40   :  { %235 = vsyncadd [#allocation6], 4294967040 }
  0x41   :  { %106 = vsyncpa [#allocation5], 1 }
  0x42   :  { %107 = vsyncpa [#allocation6], 1 }

</bundles_post_ra>
